<compile_context>
chip_gen: v5e
topology: v5e:2x2
jax: 0.10.0
libtpu: 0.0.40
codegen_flags: <defaults>
</compile_context>

<pallas_src>
import jax
import jax.numpy as jnp
from jax.experimental import pallas as pl
from jax.experimental.pallas import tpu as pltpu


def vae_kernel(x_ref, wc_ref, bc_ref, w2_ref, b2_ref, eps_ref,
               z_ref, mu_ref, logvar_ref):
    D = w2_ref.shape[-1]

    x = x_ref[...]                                   # (TB, D) f32
    xc = x.astype(wc_ref.dtype)                      # bf16 cast only if weights are bf16

    # Single fused MXU pass for both branches: (TB, D) @ (D, 2D) -> (TB, 2D), f32 accumulate.
    #   columns [:D]  -> mu pre-activation, columns [D:] -> logvar hidden pre-activation
    xw = jnp.dot(xc, wc_ref[...], preferred_element_type=jnp.float32) + bc_ref[...]

    mu = xw[:, :D]                                   # (TB, D)
    h = jax.nn.sigmoid(xw[:, D:])                    # (TB, D), f32 epilogue (EUP/VPU)

    # logvar = h @ w2^T + b2  -> lane reduction against the (1, D) w2 row; scalar b2 from SMEM.
    logvar = jnp.sum(h * w2_ref[...], axis=-1, keepdims=True) + b2_ref[0, 0]   # (TB, 1)

    # Reparameterize; (TB, 1) logvar broadcasts over the lane axis.
    z = mu + eps_ref[...] * jnp.exp(0.5 * logvar)

    # Direct stores into the separate output refs (no concat temporary, no packed slab).
    z_ref[...] = z
    mu_ref[...] = mu
    logvar_ref[...] = logvar


def pack_params(params, compute_dtype=jnp.float32):
    """One-time weight layout prep. Call ONCE at init, not per forward call.

    Builds the (D, 2D) fused RHS [W_mu^T | W1^T] so the kernel does a single MXU pass
    with no in-kernel transpose.
    """
    wmu, bmu, w1, b1, w2, b2 = params
    D = wmu.shape[0]
    # TODO(synk): for production shapes, pad D to a multiple of 128 (256 on v6e/v7x) here so
    # the xw[:, :D] / xw[:, D:] splits land on vreg lane-tile boundaries.
    w_cat = jnp.concatenate([wmu, w1], axis=0).T.astype(compute_dtype)     # (D, 2D)
    b_cat = jnp.concatenate([bmu, b1]).reshape(1, 2 * D).astype(jnp.float32)
    w2r = w2.reshape(1, D).astype(jnp.float32)
    b2s = b2.reshape(1, 1).astype(jnp.float32)
    return (w_cat, b_cat, w2r, b2s)


def _pick_tb(B, tb_max, sublane=8):
    """Largest 8-aligned divisor of B that is <= tb_max, preferring >= 2 grid steps."""
    divisors = [c for c in range(1, B + 1) if B % c == 0]
    aligned = [c for c in divisors if c <= tb_max and c % sublane == 0]
    multi = [c for c in aligned if B // c >= 2]     # pipelining + v7x megacore split
    if multi:
        return max(multi)
    if aligned:
        return max(aligned)
    return B                                        # tiny/odd B: one full-extent tile


def vae_layer(x, packed_params, eps, *, tb=512):
    """Returns (z, mu, logvar). packed_params comes from pack_params()."""
    B, D = x.shape
    w_cat, b_cat, w2r, b2s = packed_params

    TB = _pick_tb(B, tb)
    nb = B // TB
    # TODO(synk): for very large D on v7x (64 MiB VMEM), add a second 'arbitrary' grid dim
    # tiling the 2*D feature axis of w_cat with a VMEM accumulator + pl.when finalize,
    # instead of keeping the full (D, 2D) weight resident.

    # VMEM budget: single-buffered resident weights + double-buffered streamed tiles
    # (x, eps, z, mu) + f32 intermediates (xw, h, z), with headroom. Clamp to v7x physical.
    w_bytes = jnp.dtype(w_cat.dtype).itemsize
    weights_vmem = D * (2 * D) * w_bytes + (2 * D) * 4 + D * 4
    stream_vmem = 2 * 4 * (TB * D * 4) + 2 * (TB * 4)
    interm_vmem = 3 * TB * (2 * D) * 4
    vmem_limit = int(1.5 * (weights_vmem + stream_vmem + interm_vmem)) + (2 << 20)
    vmem_limit = max(16 << 20, min(vmem_limit, 64 << 20))

    tile = lambda shape: pl.BlockSpec(shape, lambda i: (i, 0))          # batch-tiled operands
    resident = lambda shape: pl.BlockSpec(                              # VMEM-resident weights:
        shape, lambda i: (0, 0), pipeline_mode=pl.Buffered(1))          # one DMA, one buffer

    out_shapes = (
        jax.ShapeDtypeStruct((B, D), jnp.float32),   # z
        jax.ShapeDtypeStruct((B, D), jnp.float32),   # mu
        jax.ShapeDtypeStruct((B, 1), jnp.float32),   # logvar
    )
    z, mu, logvar = pl.pallas_call(
        vae_kernel,
        out_shape=out_shapes,
        grid=(nb,),
        in_specs=[
            tile((TB, D)),                                        # x
            resident((D, 2 * D)),                                 # fused weight [W_mu^T|W1^T]
            resident((1, 2 * D)),                                 # fused bias
            resident((1, D)),                                     # w2 row
            pl.BlockSpec(memory_space=pltpu.MemorySpace.SMEM),    # b2 scalar
            tile((TB, D)),                                        # eps
        ],
        out_specs=(tile((TB, D)), tile((TB, D)), tile((TB, 1))),
        compiler_params=pltpu.CompilerParams(
            dimension_semantics=("parallel",),
            vmem_limit_bytes=vmem_limit),
    )(x, w_cat, b_cat, w2r, b2s, eps)
    return z, mu, logvar


def init_params(key, D):
    # Mirrors the PyTorch module's init:
    #  - mu.linear1.weight = eye(D) (set after init_custom); bias ~ U(-1/sqrt(D), 1/sqrt(D))
    #  - logvar.linear1.weight ~ N(0, 1/sqrt(D)); bias ~ U(+-1/sqrt(D))
    #  - logvar.linear2.weight ~ N(0, 1/sqrt(D)); bias = -2
    k1, k2, k3, k4 = jax.random.split(key, 4)
    bound = 1.0 / jnp.sqrt(jnp.float32(D))
    wmu = jnp.eye(D, dtype=jnp.float32)
    bmu = jax.random.uniform(k1, (D,), jnp.float32, -bound, bound)
    w1 = bound * jax.random.normal(k2, (D, D), jnp.float32)
    b1 = jax.random.uniform(k3, (D,), jnp.float32, -bound, bound)
    w2 = bound * jax.random.normal(k4, (1, D), jnp.float32)
    b2 = jnp.full((1,), -2.0, dtype=jnp.float32)
    return (wmu, bmu, w1, b1, w2, b2)


if __name__ == "__main__":
    B, D = 8, 32
    key = jax.random.PRNGKey(0)
    kx, kp, ke = jax.random.split(key, 3)

    x = jax.random.normal(kx, (B, D), jnp.float32)
    params = init_params(kp, D)
    # torch.randn_like(mu) -> sampled outside the kernel so the run is deterministic.
    # TODO(synk): optionally generate eps in-kernel (pltpu.prng_random_bits + Box-Muller) to
    # cut streamed input HBM traffic ~1/3; kept external here for bit-exact reproducibility.
    eps = jax.random.normal(ke, (B, D), jnp.float32)

    # f32 path (reference-accurate). Weights packed ONCE.
    packed_f32 = pack_params(params, jnp.float32)
    z, mu, logvar = vae_layer(x, packed_f32, eps)
    jax.block_until_ready((z, mu, logvar))

    # Pure-JAX reference check.
    wmu, bmu, w1, b1, w2, b2 = params
    mu_ref = x @ wmu.T + bmu
    h_ref = jax.nn.sigmoid(x @ w1.T + b1)
    lv_ref = h_ref @ w2.T + b2
    z_ref = mu_ref + eps * jnp.exp(0.5 * lv_ref)
    assert jnp.allclose(mu, mu_ref, atol=1e-5)
    assert jnp.allclose(logvar, lv_ref, atol=1e-5)
    assert jnp.allclose(z, z_ref, atol=1e-5)

    # bf16-MXU fast path (valid on v5e/v6e/v7x): bf16 weights/LHS, f32 accumulate + f32 epilogue.
    packed_bf16 = pack_params(params, jnp.bfloat16)
    z16, mu16, lv16 = vae_layer(x, packed_bf16, eps)
    jax.block_until_ready((z16, mu16, lv16))
    assert jnp.allclose(mu16, mu_ref, atol=5e-2)
    assert jnp.allclose(lv16, lv_ref, atol=5e-2)
    assert jnp.allclose(z16, z_ref, atol=5e-2)

    print("KERNEL_OK")
</pallas_src>

<mosaic_0001>
module attributes {stable_mosaic.version = 11 : i64} {
  func.func @vae_kernel(%arg0: i32, %arg1: memref<8x32xf32, #tpu.memory_space<vmem>>, %arg2: memref<32x64xf32, #tpu.memory_space<vmem>>, %arg3: memref<1x64xf32, #tpu.memory_space<vmem>>, %arg4: memref<1x32xf32, #tpu.memory_space<vmem>>, %arg5: memref<1x1xf32, #tpu.memory_space<smem>>, %arg6: memref<8x32xf32, #tpu.memory_space<vmem>>, %arg7: memref<8x32xf32, #tpu.memory_space<vmem>>, %arg8: memref<8x32xf32, #tpu.memory_space<vmem>>, %arg9: memref<8x1xf32, #tpu.memory_space<vmem>>) attributes {dimension_semantics = [#tpu.dimension_semantics<parallel>], iteration_bounds = array<i64: 1>, scalar_prefetch = 0 : i64, scratch_operands = 0 : i64, tpu.core_type = #tpu.core_type<tc>, window_params = [{transform_indices = @transform_0, window_bounds = array<i64: 8, 32>}, {pipeline_mode = #tpu.pipeline_mode<synchronous>, transform_indices = @transform_1, window_bounds = array<i64: 32, 64>}, {pipeline_mode = #tpu.pipeline_mode<synchronous>, transform_indices = @transform_2, window_bounds = array<i64: 1, 64>}, {pipeline_mode = #tpu.pipeline_mode<synchronous>, transform_indices = @transform_3, window_bounds = array<i64: 1, 32>}, {transform_indices = @transform_4, window_bounds = array<i64: 1, 1>}, {transform_indices = @transform_5, window_bounds = array<i64: 8, 32>}, {transform_indices = @transform_6, window_bounds = array<i64: 8, 32>}, {transform_indices = @transform_7, window_bounds = array<i64: 8, 32>}, {transform_indices = @transform_8, window_bounds = array<i64: 8, 1>}]} {
    %c0 = arith.constant 0 : index
    %c0_0 = arith.constant 0 : index
    %0 = vector.load %arg1[%c0, %c0_0] : memref<8x32xf32, #tpu.memory_space<vmem>>, vector<8x32xf32>
    %c0_1 = arith.constant 0 : index
    %c0_2 = arith.constant 0 : index
    %1 = vector.load %arg2[%c0_1, %c0_2] : memref<32x64xf32, #tpu.memory_space<vmem>>, vector<32x64xf32>
    %cst = arith.constant dense<0.000000e+00> : vector<8x64xf32>
    %2 = tpu.matmul %0, %1, %cst {dimension_numbers = #tpu.dot_dimension_numbers<[1], [0], [0], [1], [0, 0, 1, 1], [], []>} : vector<8x32xf32>, vector<32x64xf32>, vector<8x64xf32> -> vector<8x64xf32>
    %c0_3 = arith.constant 0 : index
    %c0_4 = arith.constant 0 : index
    %3 = vector.load %arg3[%c0_3, %c0_4] : memref<1x64xf32, #tpu.memory_space<vmem>>, vector<1x64xf32>
    %4 = vector.broadcast %3 : vector<1x64xf32> to vector<8x64xf32>
    %5 = arith.addf %2, %4 : vector<8x64xf32>
    %6 = vector.extract_strided_slice %5 {offsets = [0, 0], sizes = [8, 32], strides = [1, 1]} : vector<8x64xf32> to vector<8x32xf32>
    %7 = vector.extract_strided_slice %5 {offsets = [0, 32], sizes = [8, 32], strides = [1, 1]} : vector<8x64xf32> to vector<8x32xf32>
    %8 = arith.negf %7 : vector<8x32xf32>
    %9 = math.exp %8 : vector<8x32xf32>
    %cst_5 = arith.constant 1.000000e+00 : f32
    %10 = vector.broadcast %cst_5 : f32 to vector<8x32xf32>
    %11 = arith.addf %10, %9 : vector<8x32xf32>
    %12 = arith.divf %10, %11 : vector<8x32xf32>
    %c0_6 = arith.constant 0 : index
    %c0_7 = arith.constant 0 : index
    %13 = vector.load %arg4[%c0_6, %c0_7] : memref<1x32xf32, #tpu.memory_space<vmem>>, vector<1x32xf32>
    %14 = vector.broadcast %13 : vector<1x32xf32> to vector<8x32xf32>
    %15 = arith.mulf %12, %14 : vector<8x32xf32>
    %cst_8 = arith.constant dense<0.000000e+00> : vector<8xf32>
    %16 = vector.multi_reduction <add>, %15, %cst_8 [1] : vector<8x32xf32> to vector<8xf32>
    %17 = vector.shape_cast %16 : vector<8xf32> to vector<8x1xf32>
    %c0_9 = arith.constant 0 : index
    %c0_10 = arith.constant 0 : index
    %18 = memref.load %arg5[%c0_9, %c0_10] : memref<1x1xf32, #tpu.memory_space<smem>>
    %19 = vector.broadcast %18 : f32 to vector<8x1xf32>
    %20 = arith.addf %17, %19 : vector<8x1xf32>
    %c0_11 = arith.constant 0 : index
    %c0_12 = arith.constant 0 : index
    %21 = vector.load %arg6[%c0_11, %c0_12] : memref<8x32xf32, #tpu.memory_space<vmem>>, vector<8x32xf32>
    %cst_13 = arith.constant 5.000000e-01 : f32
    %22 = vector.broadcast %cst_13 : f32 to vector<8x1xf32>
    %23 = arith.mulf %22, %20 : vector<8x1xf32>
    %24 = math.exp %23 : vector<8x1xf32>
    %25 = vector.broadcast %24 : vector<8x1xf32> to vector<8x32xf32>
    %26 = arith.mulf %21, %25 : vector<8x32xf32>
    %27 = arith.addf %6, %26 : vector<8x32xf32>
    %c0_14 = arith.constant 0 : index
    %c0_15 = arith.constant 0 : index
    %28 = vector.load %arg7[%c0_14, %c0_15] : memref<8x32xf32, #tpu.memory_space<vmem>>, vector<8x32xf32>
    tpu.vector_store %arg7[%c0_14, %c0_15], %27 {strides = array<i32>} : memref<8x32xf32, #tpu.memory_space<vmem>>, vector<8x32xf32>,
    %c0_16 = arith.constant 0 : index
    %c0_17 = arith.constant 0 : index
    %29 = vector.load %arg8[%c0_16, %c0_17] : memref<8x32xf32, #tpu.memory_space<vmem>>, vector<8x32xf32>
    tpu.vector_store %arg8[%c0_16, %c0_17], %6 {strides = array<i32>} : memref<8x32xf32, #tpu.memory_space<vmem>>, vector<8x32xf32>,
    %c0_18 = arith.constant 0 : index
    %c0_19 = arith.constant 0 : index
    %30 = vector.load %arg9[%c0_18, %c0_19] : memref<8x1xf32, #tpu.memory_space<vmem>>, vector<8x1xf32>
    tpu.vector_store %arg9[%c0_18, %c0_19], %20 {strides = array<i32>} : memref<8x1xf32, #tpu.memory_space<vmem>>, vector<8x1xf32>,
    return
  }
  func.func @transform_0(%arg0: i32) -> (i32, i32) {
    %c0_i32 = arith.constant 0 : i32
    %c0_i32_0 = arith.constant 0 : i32
    return %arg0, %c0_i32 : i32, i32
  }
  func.func @transform_1(%arg0: i32) -> (i32, i32) {
    %c0_i32 = arith.constant 0 : i32
    %c0_i32_0 = arith.constant 0 : i32
    %c0_i32_1 = arith.constant 0 : i32
    return %c0_i32, %c0_i32_0 : i32, i32
  }
  func.func @transform_2(%arg0: i32) -> (i32, i32) {
    %c0_i32 = arith.constant 0 : i32
    %c0_i32_0 = arith.constant 0 : i32
    %c0_i32_1 = arith.constant 0 : i32
    return %c0_i32, %c0_i32_0 : i32, i32
  }
  func.func @transform_3(%arg0: i32) -> (i32, i32) {
    %c0_i32 = arith.constant 0 : i32
    %c0_i32_0 = arith.constant 0 : i32
    %c0_i32_1 = arith.constant 0 : i32
    return %c0_i32, %c0_i32_0 : i32, i32
  }
  func.func @transform_4(%arg0: i32) -> (i32, i32) {
    %c0_i32 = arith.constant 0 : i32
    %c0_i32_0 = arith.constant 0 : i32
    %c0_i32_1 = arith.constant 0 : i32
    return %c0_i32, %c0_i32_0 : i32, i32
  }
  func.func @transform_5(%arg0: i32) -> (i32, i32) {
    %c0_i32 = arith.constant 0 : i32
    %c0_i32_0 = arith.constant 0 : i32
    return %arg0, %c0_i32 : i32, i32
  }
  func.func @transform_6(%arg0: i32) -> (i32, i32) {
    %c0_i32 = arith.constant 0 : i32
    %c0_i32_0 = arith.constant 0 : i32
    return %arg0, %c0_i32 : i32, i32
  }
  func.func @transform_7(%arg0: i32) -> (i32, i32) {
    %c0_i32 = arith.constant 0 : i32
    %c0_i32_0 = arith.constant 0 : i32
    return %arg0, %c0_i32 : i32, i32
  }
  func.func @transform_8(%arg0: i32) -> (i32, i32) {
    %c0_i32 = arith.constant 0 : i32
    %c0_i32_0 = arith.constant 0 : i32
    return %arg0, %c0_i32 : i32, i32
  }
}

</mosaic_0001>

<bundles_post_ra>
// kernel: tpu_custom_call.1
= control target key start
LH: loop header
LB: loop body
LE: loop exit
PB: predicated region body
PF: predicated region fallthrough
CT: control target
= control target key end

     0   :  { %15 = vsyncpa [#allocation4], 0  ;;  %s421_s0 = inlined_call_operand.hbm [shape: f32[8,32], index: 0, kind: input, shape index: {}]   ;;  %s422_s1 = inlined_call_operand.hbm [shape: f32[32,64], index: 1, kind: input, shape index: {}]   ;;  %s423_s2 = inlined_call_operand.vmem [shape: f32[1,64], index: 2, kind: input, shape index: {}]   ;;  %s424_s3 = inlined_call_operand.vmem [shape: f32[1,32], index: 3, kind: input, shape index: {}]   ;;  %s425_s4 = inlined_call_operand.<no memory space> [shape: f32[1,1], index: 4, kind: input, shape index: {}]   ;;  %s426_s5 = inlined_call_operand.hbm [shape: f32[8,32], index: 5, kind: input, shape index: {}]   ;;  %s427_s6 = inlined_call_operand.hbm [shape: f32[8,32], index: 6, kind: output, shape index: {0}]   ;;  %s428_s7 = inlined_call_operand.hbm [shape: f32[8,32], index: 7, kind: output, shape index: {1}]   ;;  %s429_s8 = inlined_call_operand.vmem [shape: f32[8,1], index: 8, kind: output, shape index: {2}]  }
   0x1   :  { %16 = vsyncpa [#allocation7], 0 }
   0x2   :  { %17 = vsyncpa [#allocation5], 0  ;;  %s34_s29 = sshll.u32 %s422_s1, 4  ;;  %s35_s29 = int_to_ptr.hbm [resolvable:$true] %s34_s29 }
   0x3   :  { %18 = vsyncpa [#allocation11], 0  ;;  %s336_s30 = smov [#allocation6]   ;;  %s24_s12 = sshll.u32 %s421_s0, 4  ;;  %s25_s12 = int_to_ptr.hbm [resolvable:$true] %s24_s12 }
   0x4   :  { %s36_s9 = sshll.u32 %s336_s30, 4  ;;  %s337_s13 = smov 128   ;;  %s37_s9 = int_to_ptr.vmem [resolvable:$true] %s36_s9 }
   0x5   :  { %s338_s14 = smov 8   ;;  %s339_s15 = smov [#allocation3]  }
   0x6   :  { %42 = dma.hbm_to_vmem [thread:$0]  %s35_s29, 512, %s37_s9, [#allocation7], %s337_s13, %s337_s13, %s338_s14  }
   0x7   :  { %s26_s16 = sshll.u32 %s339_s15, 4  ;;  %s54_s19 = sshll.u32 %s426_s5, 4  ;;  %s27_s16 = int_to_ptr.vmem [resolvable:$true] %s26_s16  ;;  %s55_s19 = int_to_ptr.hbm [resolvable:$true] %s54_s19 }
   0x8   :  { %29 = dma.hbm_to_vmem [thread:$0]  %s25_s12, 128, %s27_s16, [#allocation4]  }
   0x9   :  { %s340_s1 = smov [#allocation8]  }
   0xa   :  { %s56_s20 = sshll.u32 %s340_s1, 4  ;;  %s57_s20 = int_to_ptr.vmem [resolvable:$true] %s56_s20 }
   0xb   :  { %59 = dma.hbm_to_vmem [thread:$0]  %s55_s19, 128, %s57_s20, [#allocation7]  }
   0xc   :  { %328 = dma.done.wait [#allocation4], 128  }
   0xd   :  { %329 = vsyncadd [#allocation4], 4294967168 }
   0xe   :  { %330 = dma.done.wait [#allocation7], 640  }
   0xf   :  { %331 = vsyncadd [#allocation7], 4294966656  ;;  %v76_v0 = vld [vmem:[#allocation6 + $0x18] sm:$0xff]  ;;  %v75_v1 = vld [vmem:[#allocation6 + $0x10] sm:$0xff]  ;;  %s341_s5 = smov 32   ;;  %vm81_vm0 = vcmask 261120   ;;  %v139_v26 = vstv %s425_s4 }
  0x10   :  { %97 = vmatpush.msra.mxu0 %v76_v0  ;;  %v74_v2 = vld [vmem:[#allocation6 + $0x8] sm:$0xff]  ;;  %v200_v3 = vld [vmem:[%s424_s3] ss:$0 sm:$0xff]  ;;  %v73_v4 = vld [vmem:[#allocation6] sm:$0xff]  ;;  %s343_s3 = smov [#allocation10]   ;;  %s169_s27 = sshll.u32 %s428_s7, 4  ;;  %s170_s27 = int_to_ptr.hbm [resolvable:$true] %s169_s27 }
  0x11   :  { %127 = vrot.lane.b32.xlu0 %v200_v3, %s341_s5  ;;  %v72_v5 = vld [vmem:[#allocation3] sm:$0xff]  ;;  %s167_s24 = sshll.u32 %s343_s3, 4  ;;  %vm149_vm5 = vcmask 7168   ;;  %v141_v31 = vld [vmem:[#allocation8] sm:$0xff]  ;;  %s344_s7 = smov [#allocation9]   ;;  %s168_s24 = int_to_ptr.vmem [resolvable:$true] %s167_s24 }
  0x12   :  { %98 = vmatpush.msra.mxu0 %v75_v1  ;;  %v201_v6 = vld [vmem:[%s423_s2] ss:$0 sm:$0xff]  ;;  %s342_s2 = smov 96   ;;  %s156_s10 = sshll.u32 %s344_s7, 4  ;;  %s157_s10 = int_to_ptr.vmem [resolvable:$true] %s156_s10 }
  0x13   :  { %s158_s13 = sshll.u32 %s427_s6, 4  ;;  %s159_s13 = int_to_ptr.hbm [resolvable:$true] %s158_s13 }
  0x14   :  { %99 = vmatpush.msra.mxu0 %v74_v2 }
  0x16   :  { %100 = vmatpush.msra.mxu0 %v73_v4 }
  0x17   :  { %189 = vmatmul.msk.f32.vlgmr.msra.gmra.mxu0 %vm81_vm0, %v72_v5 }
  0x83   :  { %v128_v19 = vpop.permute.xlu0 %127 }
  0x94   :  { %v102_v7 = vpop.f32.mrf.mxu0 }
  0x95   :  { %v103_v8 = vadd.f32 %v201_v6, %v102_v7 }
  0x97   :  { %v190_v9 = vmul.f32 -1.442695, %v103_v8  ;;  %148 = vst.msk [vmem:[#allocation10] sm:$0xff] %vm81_vm0, %v103_v8 }
  0x98   :  { %172 = dma.vmem_to_hbm [thread:$0]  %s168_s24, 128, %s170_s27, [#allocation11]  }
  0x99   :  { %202 = vpow2.f32 %v190_v9 }
  0x9f   :  { %v203_v10 = vpop.eup %202 }
  0xa0   :  { %v108_v11 = vadd.f32 1.0, %v203_v10 }
  0xa2   :  { %204 = vrcp.f32 %v108_v11  ;;  %v120_v15 = vand.u32 2147483648, %v108_v11  ;;  %v118_v17 = vand.u32 2147483647, %v108_v11  ;;  %vm114_vm2 = vweird.f32 %v108_v11 }
  0xa4   :  { %v121_v20 = vor.u32 1.1754944e-38, %v120_v15  ;;  %vm119_vm4 = vcmp.eq.f32.partialorder %v118_v17, 8.507059e+37 }
  0xa8   :  { %v205_v12 = vpop.eup %204 }
  0xa9   :  { %v110_v13 = vmul.f32 %v205_v12, %v108_v11  ;;  %vm115_vm1 = vweird.f32 %v205_v12 }
  0xaa   :  { %vm116_vm3 = vmor %vm114_vm2, %vm115_vm1 }
  0xab   :  { %v111_v14 = vsub.f32 1.0, %v110_v13 }
  0xad   :  { %v112_v16 = vmul.f32 %v205_v12, %v111_v14 }
  0xaf   :  { %v113_v18 = vadd.f32 %v205_v12, %v112_v16 }
  0xb1   :  { %v117_v21 = vsel %vm116_vm3, %v205_v12, %v113_v18 }
  0xb2   :  { %v122_v22 = vsel %vm119_vm4, %v121_v20, %v117_v21 }
  0xb3   :  { %v130_v23 = vmul.f32 %v128_v19, %v122_v22 }
  0xb5   :  { %132 = vrot.lane.b32.xlu0 %v130_v23, %s342_s2 }
 0x127   :  { %v133_v24 = vpop.permute.xlu0 %132 }
 0x128   :  { %v135_v25 = vsel %vm81_vm0, %v133_v24, 0.0 }
 0x129   :  { %136 = vadd.xlane.f32.xlu1 %v135_v25 }
 0x19c   :  { %v137_v27 = vpop.xlane.xlu1 %136 }
 0x19d   :  { %v140_v28 = vadd.f32 %v139_v26, %v137_v27 }
 0x19f   :  { %v142_v29 = vmul.f32 0.5, %v140_v28  ;;  %150 = vst.msk [vmem:[%s429_s8] sm:$0xff] %vm149_vm5, %v140_v28 }
 0x1a1   :  { %v143_v30 = vmul.f32 1.442695, %v142_v29 }
 0x1a3   :  { %206 = vpow2.f32 %v143_v30 }
 0x1a9   :  { %v207_v32 = vpop.eup %206 }
 0x1aa   :  { %v145_v33 = vmul.f32 %v207_v32, %v141_v31 }
 0x1ac   :  { %v146_v34 = vadd.f32 %v145_v33, %v103_v8 }
 0x1ae   :  { %147 = vst.msk [vmem:[#allocation9] sm:$0xff] %vm81_vm0, %v146_v34 }
 0x1af   :  { %161 = dma.vmem_to_hbm [thread:$0]  %s157_s10, 128, %s159_s13, [#allocation5]  }
 0x1b0   :  { %332 = dma.done.wait [#allocation5], 128  }
 0x1b1   :  { %333 = vsyncadd [#allocation5], 4294967168 }
 0x1b2   :  { %334 = dma.done.wait [#allocation11], 128  }
 0x1b3   :  { %335 = vsyncadd [#allocation11], 4294967168 }
 0x1b4   :  { %185 = vsyncpa [#allocation4], 1 }
 0x1b5   :  { %186 = vsyncpa [#allocation7], 1 }
 0x1b6   :  { %187 = vsyncpa [#allocation5], 1 }
 0x1b7   :  { %188 = vsyncpa [#allocation11], 1 }

</bundles_post_ra>
